<compile_context>
chip_gen: v7x
topology: tpu7x:2x2x1
jax: 0.10.0
libtpu: 0.0.40
codegen_flags: <defaults>
</compile_context>

<pallas_src>
import functools

import jax
import jax.numpy as jnp
from jax.experimental import pallas as pl
from jax.experimental.pallas import tpu as pltpu


def _round_up(a, b):
    return (a + b - 1) // b * b


def _vmem_capacity_bytes():
    try:
        return int(pltpu.get_tpu_info().vmem_capacity_bytes)
    except Exception:
        return 64 << 20  # conservative fallback (v7x per-TC size)


def _auto_tile_and_vmem(n, c, itemsize):
    """Pick a batch tile that keeps double-buffered x + f32 temporaries in VMEM."""
    phys = _vmem_capacity_bytes()
    # ~25% headroom: ~96 MiB on 128 MiB chips (v5e/v6e), ~48 MiB on v7x (64 MiB/TC).
    vmem_limit = int(min((phys * 3) // 4, 96 << 20))
    # per batch-row bytes: double-buffered x tile (2*itemsize) plus ~4 full-width
    # f32 temporaries (cast x, logits, exp, masked logits) plus labels.
    per_row = c * (2 * itemsize + 16) + 16
    tile_n = max(8, min(1024, (vmem_limit // per_row) // 8 * 8))
    tile_n = min(tile_n, _round_up(n, 8))
    # Prefer >= 2 grid steps for big batches so the "parallel" batch axis can
    # shard across both TensorCores on v7x (harmless on single-TC v5e/v6e).
    if n >= 512:
        tile_n = min(tile_n, _round_up(-(-n // 2), 8))
    return tile_n, vmem_limit


def ldam_kernel(x_ref, tgt_ref, sm_ref, out_ref, *, s, n_rows):
    """One batch tile of fused LDAM-margin + softmax cross-entropy.

    x_ref   : (TN, C)  logits (f32 or bf16; cast to f32 after load)
    tgt_ref : (TN, 1)  i32 class labels (garbage past n_rows; masked in-kernel)
    sm_ref  : (1, C)   f32 per-class margins, pre-scaled by s
    out_ref : (1, 128) f32 lane-dense partial loss sum for this tile
    """
    x = x_ref[...].astype(jnp.float32)            # bf16 stays bf16 in HBM; cast here
    tgt = tgt_ref[...]                             # (TN, 1) int32
    sm = sm_ref[...].astype(jnp.float32)           # (1, C) = s * m_list
    tn, c = x.shape

    # Row validity for the ragged last tile (no wrapper-side jnp.pad of x).
    row = jax.lax.broadcasted_iota(jnp.int32, (tn, 1), 0)
    row_valid = (pl.program_id(0) * tn + row) < n_rows        # (TN, 1) bool

    # One-hot mask from a (1, C) iota; the compare broadcasts to (TN, C) without
    # materializing a (TN, C) int32 tensor.
    col = jax.lax.broadcasted_iota(jnp.int32, (1, c), 1)
    mask = col == tgt                                          # (TN, C) bool

    # Fused margin + scale: s*x - (s*m)*onehot.  Sanitize OOB rows to 0.0 BEFORE
    # the exp pass so garbage (NaN/Inf) can't leak via NaN*0.
    logits = jnp.where(row_valid, s * x - jnp.where(mask, sm, 0.0), 0.0)

    # Target logit right after logits (shorter mask/logits live ranges).
    tgt_logit = jnp.sum(jnp.where(mask, logits, 0.0), axis=1, keepdims=True)  # (TN, 1)

    # Numerically stable per-row log-sum-exp.
    mx = jnp.max(logits, axis=1, keepdims=True)
    lse = jnp.log(jnp.sum(jnp.exp(logits - mx), axis=1, keepdims=True)) + mx  # (TN, 1)

    # weight=None (module default) -> unweighted per-row loss; drop padded rows.
    # TODO(synk): per-class `weight` support (weighted sum + weight-sum output).
    valid = row_valid.astype(jnp.float32)
    tile_sum = jnp.sum((lse - tgt_logit) * valid)

    # lane-dense store (unmasked vst); wrapper reads lane 0 of each tile row.
    out_ref[...] = jnp.full((1, 128), tile_sum, dtype=jnp.float32)


def ldam_loss(x, target, m_list, s=30.0, tile_n=None, vmem_limit_bytes=None):
    """LDAMLoss.forward(x, target) with weight=None. Returns the scalar mean loss."""
    assert s > 0
    n, c = x.shape
    # Keep x in its incoming dtype (f32 or bf16) — cast happens inside the kernel.
    tgt = target.reshape(n, 1).astype(jnp.int32)
    sm = (float(s) * m_list.astype(jnp.float32)).reshape(1, c)   # pre-scaled margins

    # TODO(synk): for vocab-scale C (>~8k on v7x, >~16k on v5e/v6e) add a second
    # 'arbitrary' grid axis over C with an online-softmax (running max / sum-exp)
    # accumulator; optionally chunk rows with an unrolled lax.fori_loop if the
    # compiler reports VMEM spill.

    itemsize = jnp.dtype(x.dtype).itemsize
    auto_tile, auto_vmem = _auto_tile_and_vmem(n, c, itemsize)
    if tile_n is None:
        tile_n = auto_tile
    else:
        tile_n = max(8, min(_round_up(int(tile_n), 8), auto_tile, _round_up(n, 8)))
    if vmem_limit_bytes is None:
        vmem_limit_bytes = auto_vmem

    num_tiles = -(-n // tile_n)   # ragged last tile handled in-kernel (no jnp.pad)

    cost = pl.CostEstimate(
        flops=7 * n * c,
        transcendentals=n * c,
        bytes_accessed=n * c * itemsize + n * 4 + c * 4 + num_tiles * 128 * 4,
    )

    partial = pl.pallas_call(
        functools.partial(ldam_kernel, s=float(s), n_rows=n),
        grid=(num_tiles,),
        out_shape=jax.ShapeDtypeStruct((num_tiles, 128), jnp.float32),
        in_specs=[
            pl.BlockSpec((tile_n, c), lambda i: (i, 0)),   # logits tile
            pl.BlockSpec((tile_n, 1), lambda i: (i, 0)),   # labels tile
            pl.BlockSpec((1, c), lambda i: (0, 0)),        # margins (resident, no re-DMA)
        ],
        out_specs=pl.BlockSpec((1, 128), lambda i: (i, 0)),
        compiler_params=pltpu.CompilerParams(
            dimension_semantics=("parallel",),
            vmem_limit_bytes=int(vmem_limit_bytes),
        ),
        cost_estimate=cost,
    )(x, tgt, sm)

    # plain mean reduction over the real (unpadded) batch
    return jnp.sum(partial[:, 0]) / n


def make_m_list(cls_num_list, max_m=0.5):
    """m_list = (1 / n_c^{1/4}) scaled so that max(m_list) == max_m."""
    cls = jnp.asarray(cls_num_list, dtype=jnp.float32)
    m_list = 1.0 / jnp.sqrt(jnp.sqrt(cls))
    m_list = m_list * (max_m / jnp.max(m_list))
    return m_list


def _ref_loss(x, target, m_list, s=30.0):
    """Pure-JAX reference (same math as the PyTorch module, weight=None)."""
    c = x.shape[1]
    onehot = jax.nn.one_hot(target, c, dtype=jnp.float32)
    batch_m = (onehot * m_list[None, :]).sum(axis=1, keepdims=True)
    out = jnp.where(onehot > 0, x.astype(jnp.float32) - batch_m, x.astype(jnp.float32)) * s
    return jnp.mean(jax.nn.logsumexp(out, axis=1) - (onehot * out).sum(axis=1))


if __name__ == "__main__":
    key = jax.random.PRNGKey(0)

    # ---- Test 1: small, deterministic example (batch=8, num_classes=16) ----
    N, C = 8, 16
    kx, kt, kx2, kt2 = jax.random.split(key, 4)
    cls_num_list = [int(100.0 * (0.8 ** i)) + 1 for i in range(C)]
    m_list = make_m_list(cls_num_list, max_m=0.5)

    x = jax.random.normal(kx, (N, C), dtype=jnp.float32)
    target = jax.random.randint(kt, (N,), 0, C, dtype=jnp.int32)

    loss = ldam_loss(x, target, m_list, s=30.0)
    jax.block_until_ready(loss)
    ref = _ref_loss(x, target, m_list, s=30.0)
    assert jnp.allclose(loss, ref, rtol=1e-5, atol=1e-5), (loss, ref)

    # ---- Test 2: multi-tile grid + in-kernel ragged last-tile masking (no pad) ----
    N2, C2 = 300, 160
    cls_num_list2 = [int(200.0 * (0.9 ** i)) + 1 for i in range(C2)]
    m_list2 = make_m_list(cls_num_list2, max_m=0.5)
    x2 = jax.random.normal(kx2, (N2, C2), dtype=jnp.float32)
    target2 = jax.random.randint(kt2, (N2,), 0, C2, dtype=jnp.int32)

    loss2 = ldam_loss(x2, target2, m_list2, s=30.0, tile_n=128)  # 3 tiles, 44 real rows in last
    jax.block_until_ready(loss2)
    ref2 = _ref_loss(x2, target2, m_list2, s=30.0)
    assert jnp.allclose(loss2, ref2, rtol=1e-5, atol=1e-5), (loss2, ref2)

    print("KERNEL_OK")
</pallas_src>

<mosaic_0001>
module attributes {stable_mosaic.version = 11 : i64} {
  func.func @ldam_kernel(%arg0: i32, %arg1: memref<8x16xf32, #tpu.memory_space<vmem>>, %arg2: memref<8x1xi32, #tpu.memory_space<vmem>>, %arg3: memref<1x16xf32, #tpu.memory_space<vmem>>, %arg4: memref<1x128xf32, #tpu.memory_space<vmem>>) attributes {dimension_semantics = [#tpu.dimension_semantics<parallel>], iteration_bounds = array<i64: 1>, scalar_prefetch = 0 : i64, scratch_operands = 0 : i64, tpu.core_type = #tpu.core_type<tc>, window_params = [{transform_indices = @transform_0, window_bounds = array<i64: 8, 16>}, {transform_indices = @transform_1, window_bounds = array<i64: 8, 1>}, {pipeline_mode = #tpu.pipeline_mode<synchronous>, transform_indices = @transform_2, window_bounds = array<i64: 1, 16>}, {transform_indices = @transform_3, window_bounds = array<i64: 1, 128>}]} {
    %c0 = arith.constant 0 : index
    %c0_0 = arith.constant 0 : index
    %0 = vector.load %arg1[%c0, %c0_0] : memref<8x16xf32, #tpu.memory_space<vmem>>, vector<8x16xf32>
    %c0_1 = arith.constant 0 : index
    %c0_2 = arith.constant 0 : index
    %1 = vector.load %arg2[%c0_1, %c0_2] : memref<8x1xi32, #tpu.memory_space<vmem>>, vector<8x1xi32>
    %c0_3 = arith.constant 0 : index
    %c0_4 = arith.constant 0 : index
    %2 = vector.load %arg3[%c0_3, %c0_4] : memref<1x16xf32, #tpu.memory_space<vmem>>, vector<1x16xf32>
    %3 = tpu.iota {dimensions = array<i32: 0>} : vector<8x1xi32>
    %c8_i32 = arith.constant 8 : i32
    %4 = arith.muli %arg0, %c8_i32 : i32
    %5 = vector.broadcast %4 : i32 to vector<8x1xi32>
    %6 = arith.addi %5, %3 : vector<8x1xi32>
    %c8_i32_5 = arith.constant 8 : i32
    %7 = vector.broadcast %c8_i32_5 : i32 to vector<8x1xi32>
    %8 = arith.cmpi slt, %6, %7 : vector<8x1xi32>
    %9 = tpu.iota {dimensions = array<i32: 1>} : vector<1x16xi32>
    %10 = vector.broadcast %9 : vector<1x16xi32> to vector<8x16xi32>
    %11 = vector.broadcast %1 : vector<8x1xi32> to vector<8x16xi32>
    %12 = arith.cmpi eq, %10, %11 : vector<8x16xi32>
    %cst = arith.constant 3.000000e+01 : f32
    %13 = vector.broadcast %cst : f32 to vector<8x16xf32>
    %14 = arith.mulf %13, %0 : vector<8x16xf32>
    %cst_6 = arith.constant 0.000000e+00 : f32
    %15 = vector.shape_cast %2 : vector<1x16xf32> to vector<1x16xf32>
    %16 = vector.broadcast %15 : vector<1x16xf32> to vector<8x16xf32>
    %17 = vector.broadcast %cst_6 : f32 to vector<8x16xf32>
    %18 = arith.select %12, %16, %17 : vector<8x16xi1>, vector<8x16xf32>
    %19 = arith.subf %14, %18 : vector<8x16xf32>
    %cst_7 = arith.constant 0.000000e+00 : f32
    %20 = vector.shape_cast %8 : vector<8x1xi1> to vector<8x1xi1>
    %21 = vector.broadcast %20 : vector<8x1xi1> to vector<8x16xi1>
    %22 = vector.broadcast %cst_7 : f32 to vector<8x16xf32>
    %23 = arith.select %21, %19, %22 : vector<8x16xi1>, vector<8x16xf32>
    %cst_8 = arith.constant 0.000000e+00 : f32
    %24 = vector.broadcast %cst_8 : f32 to vector<8x16xf32>
    %25 = arith.select %12, %23, %24 : vector<8x16xi1>, vector<8x16xf32>
    %cst_9 = arith.constant dense<0.000000e+00> : vector<8xf32>
    %26 = vector.multi_reduction <add>, %25, %cst_9 [1] : vector<8x16xf32> to vector<8xf32>
    %27 = vector.shape_cast %26 : vector<8xf32> to vector<8x1xf32>
    %cst_10 = arith.constant dense<0xFF800000> : vector<8xf32>
    %28 = vector.multi_reduction <maximumf>, %23, %cst_10 [1] : vector<8x16xf32> to vector<8xf32>
    %29 = vector.shape_cast %28 : vector<8xf32> to vector<8x1xf32>
    %30 = vector.broadcast %29 : vector<8x1xf32> to vector<8x16xf32>
    %31 = arith.subf %23, %30 : vector<8x16xf32>
    %32 = math.exp %31 : vector<8x16xf32>
    %cst_11 = arith.constant dense<0.000000e+00> : vector<8xf32>
    %33 = vector.multi_reduction <add>, %32, %cst_11 [1] : vector<8x16xf32> to vector<8xf32>
    %34 = vector.shape_cast %33 : vector<8xf32> to vector<8x1xf32>
    %35 = math.log %34 : vector<8x1xf32>
    %36 = arith.addf %35, %29 : vector<8x1xf32>
    %37 = arith.extui %8 : vector<8x1xi1> to vector<8x1xi32>
    %38 = arith.sitofp %37 : vector<8x1xi32> to vector<8x1xf32>
    %39 = arith.subf %36, %27 : vector<8x1xf32>
    %40 = arith.mulf %39, %38 : vector<8x1xf32>
    %41 = vector.shape_cast %40 : vector<8x1xf32> to vector<1x8x1xf32>
    %cst_12 = arith.constant dense<0.000000e+00> : vector<1xf32>
    %42 = vector.multi_reduction <add>, %41, %cst_12 [1, 2] : vector<1x8x1xf32> to vector<1xf32>
    %43 = vector.shape_cast %42 : vector<1xf32> to vector<1x1x1xf32>
    %44 = vector.extract %43[0, 0, 0] : f32 from vector<1x1x1xf32>
    %45 = vector.broadcast %44 : f32 to vector<1x128xf32>
    %c0_13 = arith.constant 0 : index
    %c0_14 = arith.constant 0 : index
    %46 = vector.load %arg4[%c0_13, %c0_14] : memref<1x128xf32, #tpu.memory_space<vmem>>, vector<1x128xf32>
    tpu.vector_store %arg4[%c0_13, %c0_14], %45 {strides = array<i32>} : memref<1x128xf32, #tpu.memory_space<vmem>>, vector<1x128xf32>,
    return
  }
  func.func @transform_0(%arg0: i32) -> (i32, i32) {
    %c0_i32 = arith.constant 0 : i32
    %c0_i32_0 = arith.constant 0 : i32
    return %arg0, %c0_i32 : i32, i32
  }
  func.func @transform_1(%arg0: i32) -> (i32, i32) {
    %c0_i32 = arith.constant 0 : i32
    %c0_i32_0 = arith.constant 0 : i32
    return %arg0, %c0_i32 : i32, i32
  }
  func.func @transform_2(%arg0: i32) -> (i32, i32) {
    %c0_i32 = arith.constant 0 : i32
    %c0_i32_0 = arith.constant 0 : i32
    %c0_i32_1 = arith.constant 0 : i32
    return %c0_i32, %c0_i32_0 : i32, i32
  }
  func.func @transform_3(%arg0: i32) -> (i32, i32) {
    %c0_i32 = arith.constant 0 : i32
    %c0_i32_0 = arith.constant 0 : i32
    return %arg0, %c0_i32 : i32, i32
  }
}

</mosaic_0001>

<bundles_post_ra>
// kernel: tpu_custom_call.1
= control target key start
LH: loop header
LB: loop body
LE: loop exit
PB: predicated region body
PF: predicated region fallthrough
CT: control target
= control target key end

     0   :  { %s166_s0 = inlined_call_operand.vmem [shape: f32[8,16], index: 0, kind: input, shape index: {}]   ;;  %s167_s1 = inlined_call_operand.vmem [shape: s32[8,1], index: 1, kind: input, shape index: {}]   ;;  %s168_s2 = inlined_call_operand.vmem [shape: f32[1,16], index: 2, kind: input, shape index: {}]   ;;  %s169_s3 = inlined_call_operand.hbm [shape: f32[1,128], index: 3, kind: output, shape index: {}]  }
   0x1   :  { %v16_v0 = vld [vmem:[%s167_s1] sm:$0xff] }
   0x2   :  { %8 = vsyncpa [#allocation3], 0  ;;  %v123_v1 = vmov 0   ;;  %v24_v2 = vlaneseq  ;;  %v15_v3 = vld [vmem:[%s166_s0] sm:$0xff]  ;;  %vm43_vm1 = vcmask 130048   ;;  %vm62_vm2 = vcmask 7168  }
   0x3   :  { %94 = vset.pattern.permute.xlu0 %v123_v1  ;;  %v89_v5 = vld [vmem:[%s168_s2] ss:$0 sm:$0xff]  ;;  %v30_v6 = vmul.f32 30.0, %v15_v3  ;;  %s124_s0 = smov [#allocation2]  }
   0x4   :  { %27 = vperm.xlu0 %94, %v16_v0   ;;  %v25_v4 = vand.u32 127, %v24_v2  ;;  %s81_s1 = sshll.u32 %s124_s0, 4  ;;  %s82_s1 = int_to_ptr.vmem [resolvable:$true] %s81_s1 }
   0x5   :  { %s99_s18 = scalar_lea.vmem %s82_s1, 16  ;;  %s103_s19 = scalar_lea.vmem %s82_s1, 32 }
   0x6   :  { %p100_p0 = scmp.ne.s32.totalorder %s82_s1, %s99_s18  ;;  %p104_p1 = scmp.lt.s32.totalorder %s82_s1, %s82_s1 }
   0x7   :  { %p105_p2 = scmp.lt.s32.totalorder %s103_s19, %s99_s18 }
   0x9   :  { %p106_p3 = por %p105_p2, %p104_p1 }
   0xb   :  { %p107_p4 = pnand %p106_p3, %p100_p0 }
  0x83   :  { %v28_v7 = vpop.permute.xlu0 %27 }
  0x84   :  { %vm29_vm0 = vcmp.eq.s32.totalorder %v25_v4, %v28_v7 }
  0x85   :  { %v37_v8 = vsel %vm29_vm0, %v89_v5, 0.0 }
  0x86   :  { %v38_v9 = vsub.f32 %v30_v6, %v37_v8 }
  0x88   :  { %v47_v10 = vsel %vm43_vm1, %v38_v9, -inf  ;;  %v42_v16 = vsel %vm29_vm0, %v38_v9, 0.0 }
  0x89   :  { %48 = vmax.xlane.f32.xlu0 %v47_v10  ;;  %v44_v17 = vsel %vm43_vm1, %v42_v16, 0.0 }
 0x116   :  { %v49_v11 = vpop.xlane.xlu0 %48 }
 0x117   :  { %v50_v12 = vsub.f32 %v38_v9, %v49_v11 }
 0x119   :  { %v51_v13 = vmul.f32 1.442695, %v50_v12 }
 0x11b   :  { %95 = vpow2.f32 %v51_v13 }
 0x125   :  { %v96_v14 = vpop.eup %95 }
 0x126   :  { %v53_v15 = vsel %vm43_vm1, %v96_v14, 0.0 }
 0x127   :  { %54 = vadd.xlane.f32.xlu1 %v53_v15 }
 0x12b   :  { %45 = vadd.xlane.f32.xlu1 %v44_v17 }
 0x1b4   :  { %v55_v18 = vpop.xlane.xlu1 %54 }
 0x1b5   :  { %97 = vlog2.f32 %v55_v18 }
 0x1b8   :  { %v46_v22 = vpop.xlane.xlu1 %45 }
 0x1bf   :  { %v98_v19 = vpop.eup %97 }
 0x1c0   :  { %v57_v20 = vmul.f32 0.6931472, %v98_v19 }
 0x1c2   :  { %v58_v21 = vadd.f32 %v57_v20, %v49_v11 }
 0x1c4   :  { %v60_v23 = vsub.f32 %v58_v21, %v46_v22 }
 0x1c6   :  { %v63_v24 = vsel %vm62_vm2, %v60_v23, 0.0 }
 0x1c7   :  { %64 = vadd.xlane.f32.xlu1 %v63_v24 }
 0x254   :  { %v65_v25 = vpop.xlane.xlu1 %64 }
 0x255   :  { %v66_v26 = vrot.slane %v65_v25, 4 }
 0x257   :  { %v67_v27 = vadd.f32 %v66_v26, %v65_v25 }
 0x259   :  { %v68_v28 = vrot.slane %v67_v27, 2 }
 0x25b   :  { %v69_v29 = vadd.f32 %v68_v28, %v67_v27 }
 0x25d   :  { %v70_v30 = vrot.slane %v69_v29, 1 }
 0x25f   :  { %v71_v31 = vadd.f32 %v70_v30, %v69_v29 }
 0x261   :  { %90 = vpush %v71_v31 }
 0x292   :  { %s91_s2 = spop %90 }
 0x293   :  { %v73_v32 = vstv %s91_s2 }
 0x294   :  { %74 = vst [vmem:[#allocation2] sm:$0x1] %v73_v32 }
 0x295   :  { %110 = shalt.err (!%p107_p4)
}
 0x296   :  { %s111_s22 = scalar_lea.hbm %s169_s3, 16 }
 0x297   :  { %p112_p5 = scmp.ne.s32.totalorder %s169_s3, %s111_s22  ;;  %p115_p6 = scmp.lt.u32.totalorder %s111_s22, %s169_s3 }
 0x299   :  { %p117_p7 = pnand %p115_p6, %p112_p5 }
 0x29b   :  { %120 = shalt.err (!%p117_p7)
}
 0x29c   :  { %84 = dma.vmem_to_hbm [thread:$0]  %s82_s1, 16, %s169_s3, [#allocation3]  }
 0x29d   :  { %121 = dma.done.wait [#allocation3], 16  }
 0x29e   :  { %122 = vsyncadd [#allocation3], 4294967280 }
 0x29f   :  { %88 = vsyncpa [#allocation3], 1 }

</bundles_post_ra>
